<compile_context>
chip_gen: v7x
topology: tpu7x:2x2x1
jax: 0.10.0
libtpu: 0.0.40
codegen_flags: <defaults>
</compile_context>

<pallas_src>
import math

import jax
import jax.numpy as jnp
import numpy as np
from jax.experimental import pallas as pl
from jax.experimental.pallas import tpu as pltpu


def _round_up(x, m):
    return (x + m - 1) // m * m


def _make_conv3x3_kernel(H, W, Cin, Cout, off, pad_len):
    """3x3 SAME conv on a lane-flat (Cin, H*W) image; output (Cout, H*W) lane-dense."""
    HW = H * W

    def kernel(x_ref, w_ref, b_ref, m_ref, o_ref, xz_ref, col_ref):
        # x_ref : (1, Cin, HW)      input image, spatial flattened row-major (y*W + x)
        # w_ref : (Cout, 9*Cin)     packed weights (bf16), K index = (kh*3+kw)*Cin + cin
        # b_ref : (Cout, 1)         bias (f32)
        # m_ref : (2, HW)           row-edge masks: [0]=valid for dx=+1, [1]=valid for dx=-1
        # o_ref : (1, Cout, HW)     output (lane-dense: HW is a multiple of 128)
        # xz_ref: (Cin, pad_len)    VMEM scratch, zero halo handled here (no HBM pad)
        # col_ref:(9*Cin, HW)       VMEM scratch, im2col matrix

        # Zero-filled halo lives in VMEM; interior gets the image.
        xz_ref[:, :off] = jnp.zeros((Cin, off), xz_ref.dtype)
        xz_ref[:, off + HW:] = jnp.zeros((Cin, pad_len - off - HW), xz_ref.dtype)
        xz_ref[:, off:off + HW] = x_ref[0].astype(xz_ref.dtype)

        # Build im2col: each tap is a static lane-offset slice of the flat image.
        # dy (+-1 row) out-of-bounds falls into the zero halo; dx (+-1 col) wrap-around
        # across row ends is zeroed by the precomputed masks.
        for tap in range(9):  # static unroll, tap = (dy+1)*3 + (dx+1)
            dy, dx = tap // 3 - 1, tap % 3 - 1
            start = off + dy * W + dx
            sh = xz_ref[:, start:start + HW]              # (Cin, HW)
            if dx == 1:
                sh = sh * m_ref[0:1, :]
            elif dx == -1:
                sh = sh * m_ref[1:2, :]
            col_ref[tap * Cin:(tap + 1) * Cin, :] = sh

        # One fused MXU matmul, K = 9*Cin, bf16 operands, f32 accumulation.
        acc = jnp.dot(w_ref[...], col_ref[...].astype(jnp.bfloat16),
                      preferred_element_type=jnp.float32)
        acc = acc + b_ref[...]                            # (Cout,1) broadcast over lanes
        o_ref[0] = acc.astype(o_ref.dtype)

    return kernel


def conv3x3_same_lane_dense(x_flat, w_packed, b_col, masks, H, W):
    """x_flat: (B, Cin, H*W) f32 -> (B, Cout, H*W) f32 via Pallas."""
    B, Cin, HW = x_flat.shape
    Cout = w_packed.shape[0]
    off = _round_up(W + 1, 128)
    pad_len = HW + 2 * off
    kern = _make_conv3x3_kernel(H, W, Cin, Cout, off, pad_len)
    return pl.pallas_call(
        kern,
        out_shape=jax.ShapeDtypeStruct((B, Cout, HW), x_flat.dtype),
        grid_spec=pltpu.PrefetchScalarGridSpec(
            num_scalar_prefetch=0,
            grid=(B,),
            in_specs=[
                pl.BlockSpec((1, Cin, HW), lambda b: (b, 0, 0)),
                pl.BlockSpec((Cout, 9 * Cin), lambda b: (0, 0)),
                pl.BlockSpec((Cout, 1), lambda b: (0, 0)),
                pl.BlockSpec((2, HW), lambda b: (0, 0)),
            ],
            out_specs=pl.BlockSpec((1, Cout, HW), lambda b: (b, 0, 0)),
            scratch_shapes=[
                pltpu.VMEM((Cin, pad_len), jnp.float32),
                pltpu.VMEM((9 * Cin, HW), jnp.float32),
            ],
        ),
        compiler_params=pltpu.CompilerParams(
            dimension_semantics=("parallel",)),
    )(x_flat, w_packed, b_col, masks)


def make_edge_masks(H, W):
    """[0]: zero the dx=+1 tap on the last column; [1]: zero the dx=-1 tap on the first."""
    col = np.arange(H * W) % W
    m_right = (col != W - 1).astype(np.float32)
    m_left = (col != 0).astype(np.float32)
    return jnp.asarray(np.stack([m_right, m_left], axis=0))


def init_params(key, n_color, scale):
    """Deterministic params, PyTorch OIHW layout: (4*n_color, n_color, 3, 3)."""
    assert scale & (scale - 1) == 0 and scale > 1, "power-of-2 scale only"
    n_stage = int(math.log2(scale))
    params = []
    for s in range(n_stage):
        kw, kb = jax.random.split(jax.random.fold_in(key, s))
        fan_in = n_color * 9
        w = jax.random.normal(kw, (4 * n_color, n_color, 3, 3),
                              jnp.float32) / np.sqrt(fan_in)
        b = jax.random.normal(kb, (4 * n_color,), jnp.float32) * 0.01
        params.append((w, b))
    return params


def pack_params(params):
    """One-time relayout (hoisted out of the forward): OIHW -> (Cout, 9*Cin) bf16 with
    contraction index (kh*3+kw)*Cin + cin, plus bias as a (Cout, 1) f32 column."""
    packed = []
    for w, b in params:
        cout, cin = w.shape[0], w.shape[1]
        wp = jnp.transpose(w, (0, 2, 3, 1)).reshape(cout, 9 * cin).astype(jnp.bfloat16)
        packed.append((wp, b.reshape(cout, 1).astype(jnp.float32)))
    return packed


def pixel_shuffle_nchw(x, r):
    """torch.nn.PixelShuffle semantics on NCHW input."""
    B, C, H, W = x.shape
    Cout = C // (r * r)
    x = x.reshape(B, Cout, r, r, H, W)
    x = jnp.transpose(x, (0, 1, 4, 2, 5, 3))
    return x.reshape(B, Cout, H * r, W * r)


def upsample_module_v2(x_nchw, packed_params, scale):
    """Forward pass of UpsampleModulev2 (bn=False, act=False), NCHW in/out."""
    n_stage = int(math.log2(scale))
    B = x_nchw.shape[0]
    y = x_nchw
    for s in range(n_stage):
        wp, bc = packed_params[s]
        Cin, H, W = y.shape[1], y.shape[2], y.shape[3]
        masks = make_edge_masks(H, W)
        y_flat = y.reshape(B, Cin, H * W)        # free relayout: no transpose, no pad
        conv = conv3x3_same_lane_dense(y_flat, wp, bc, masks, H, W)  # (B, 4*Cin, H*W)
        # PixelShuffle(2) on the channel-major conv output.
        # TODO(synk): move this lane-interleave into the kernel's out_spec / output layout.
        conv = conv.reshape(B, Cin, 2, 2, H, W)
        y = jnp.transpose(conv, (0, 1, 4, 2, 5, 3)).reshape(B, Cin, 2 * H, 2 * W)
    return y


def reference_forward(x_nchw, params, scale, round_operands=False):
    """Pure-JAX reference mirroring the PyTorch module. With round_operands=True the conv
    operands are rounded to bf16 exactly like the kernel's MXU operands (f32 accumulation)."""
    n_stage = int(math.log2(scale))
    y = x_nchw
    for s in range(n_stage):
        w, b = params[s]
        if round_operands:
            w = w.astype(jnp.bfloat16).astype(jnp.float32)
            y = y.astype(jnp.bfloat16).astype(jnp.float32)
        y = jax.lax.conv_general_dilated(
            y, w, window_strides=(1, 1), padding="SAME",
            dimension_numbers=("NCHW", "OIHW", "NCHW"),
            precision=jax.lax.Precision.HIGHEST)
        y = y + b[None, :, None, None]
        y = pixel_shuffle_nchw(y, 2)
    return y


if __name__ == "__main__":
    key = jax.random.PRNGKey(0)
    k_x, k_p = jax.random.split(key)

    B, C, H, W = 2, 4, 16, 16          # NCHW input, n_color = 4
    scale = 2                          # power-of-2 branch, single stage
    x = jax.random.normal(k_x, (B, C, H, W), jnp.float32)

    params = init_params(k_p, C, scale)
    packed = pack_params(params)       # one-time weight relayout

    out = jax.block_until_ready(upsample_module_v2(x, packed, scale))
    assert out.shape == (B, C, H * scale, W * scale), out.shape

    # Reference with conv operands rounded to bf16 exactly as in the kernel (f32 accum),
    # so the comparison remains tight.
    ref = jax.block_until_ready(
        reference_forward(x, params, scale, round_operands=True))
    np.testing.assert_allclose(np.asarray(out), np.asarray(ref),
                               rtol=1e-4, atol=1e-4)

    print("KERNEL_OK")
</pallas_src>

<mosaic_0001>
module attributes {stable_mosaic.version = 11 : i64} {
  func.func @kernel(%arg0: i32, %arg1: memref<1x4x256xf32, #tpu.memory_space<vmem>>, %arg2: memref<16x36xbf16, #tpu.memory_space<vmem>>, %arg3: memref<16x1xf32, #tpu.memory_space<vmem>>, %arg4: memref<2x256xf32, #tpu.memory_space<vmem>>, %arg5: memref<1x16x256xf32, #tpu.memory_space<vmem>>, %arg6: memref<4x512xf32, #tpu.memory_space<vmem>>, %arg7: memref<36x256xf32, #tpu.memory_space<vmem>>) attributes {dimension_semantics = [#tpu.dimension_semantics<parallel>], iteration_bounds = array<i64: 2>, scalar_prefetch = 0 : i64, scratch_operands = 2 : i64, tpu.core_type = #tpu.core_type<tc>, window_params = [{transform_indices = @transform_0, window_bounds = array<i64: 1, 4, 256>}, {pipeline_mode = #tpu.pipeline_mode<synchronous>, transform_indices = @transform_1, window_bounds = array<i64: 16, 36>}, {pipeline_mode = #tpu.pipeline_mode<synchronous>, transform_indices = @transform_2, window_bounds = array<i64: 16, 1>}, {pipeline_mode = #tpu.pipeline_mode<synchronous>, transform_indices = @transform_3, window_bounds = array<i64: 2, 256>}, {transform_indices = @transform_4, window_bounds = array<i64: 1, 16, 256>}]} {
    %cst = arith.constant 0.000000e+00 : f32
    %0 = vector.broadcast %cst : f32 to vector<4x128xf32>
    %c0 = arith.constant 0 : index
    %c0_0 = arith.constant 0 : index
    %1 = vector.load %arg6[%c0, %c0_0] : memref<4x512xf32, #tpu.memory_space<vmem>>, vector<4x128xf32>
    tpu.vector_store %arg6[%c0, %c0_0], %0 {strides = array<i32>} : memref<4x512xf32, #tpu.memory_space<vmem>>, vector<4x128xf32>,
    %cst_1 = arith.constant 0.000000e+00 : f32
    %2 = vector.broadcast %cst_1 : f32 to vector<4x128xf32>
    %c0_2 = arith.constant 0 : index
    %c384 = arith.constant 384 : index
    %3 = vector.load %arg6[%c0_2, %c384] : memref<4x512xf32, #tpu.memory_space<vmem>>, vector<4x128xf32>
    tpu.vector_store %arg6[%c0_2, %c384], %2 {strides = array<i32>} : memref<4x512xf32, #tpu.memory_space<vmem>>, vector<4x128xf32>,
    %c0_3 = arith.constant 0 : index
    %c0_4 = arith.constant 0 : index
    %c0_5 = arith.constant 0 : index
    %4 = vector.load %arg1[%c0_3, %c0_4, %c0_5] : memref<1x4x256xf32, #tpu.memory_space<vmem>>, vector<1x4x256xf32>
    %5 = vector.shape_cast %4 : vector<1x4x256xf32> to vector<4x256xf32>
    %c0_6 = arith.constant 0 : index
    %c128 = arith.constant 128 : index
    %6 = vector.load %arg6[%c0_6, %c128] : memref<4x512xf32, #tpu.memory_space<vmem>>, vector<4x256xf32>
    tpu.vector_store %arg6[%c0_6, %c128], %5 {strides = array<i32>} : memref<4x512xf32, #tpu.memory_space<vmem>>, vector<4x256xf32>,
    %c0_7 = arith.constant 0 : index
    %c111 = arith.constant 111 : index
    %7 = vector.load %arg6[%c0_7, %c111] : memref<4x512xf32, #tpu.memory_space<vmem>>, vector<4x256xf32>
    %c1 = arith.constant 1 : index
    %c0_8 = arith.constant 0 : index
    %8 = vector.load %arg4[%c1, %c0_8] : memref<2x256xf32, #tpu.memory_space<vmem>>, vector<1x256xf32>
    %9 = vector.broadcast %8 : vector<1x256xf32> to vector<4x256xf32>
    %10 = arith.mulf %7, %9 : vector<4x256xf32>
    %c0_9 = arith.constant 0 : index
    %c0_10 = arith.constant 0 : index
    %11 = vector.load %arg7[%c0_9, %c0_10] : memref<36x256xf32, #tpu.memory_space<vmem>>, vector<4x256xf32>
    tpu.vector_store %arg7[%c0_9, %c0_10], %10 {strides = array<i32>} : memref<36x256xf32, #tpu.memory_space<vmem>>, vector<4x256xf32>,
    %c0_11 = arith.constant 0 : index
    %c112 = arith.constant 112 : index
    %12 = vector.load %arg6[%c0_11, %c112] : memref<4x512xf32, #tpu.memory_space<vmem>>, vector<4x256xf32>
    %c4 = arith.constant 4 : index
    %c0_12 = arith.constant 0 : index
    %13 = vector.load %arg7[%c4, %c0_12] : memref<36x256xf32, #tpu.memory_space<vmem>>, vector<4x256xf32>
    tpu.vector_store %arg7[%c4, %c0_12], %12 {strides = array<i32>} : memref<36x256xf32, #tpu.memory_space<vmem>>, vector<4x256xf32>,
    %c0_13 = arith.constant 0 : index
    %c113 = arith.constant 113 : index
    %14 = vector.load %arg6[%c0_13, %c113] : memref<4x512xf32, #tpu.memory_space<vmem>>, vector<4x256xf32>
    %c0_14 = arith.constant 0 : index
    %c0_15 = arith.constant 0 : index
    %15 = vector.load %arg4[%c0_14, %c0_15] : memref<2x256xf32, #tpu.memory_space<vmem>>, vector<1x256xf32>
    %16 = vector.broadcast %15 : vector<1x256xf32> to vector<4x256xf32>
    %17 = arith.mulf %14, %16 : vector<4x256xf32>
    %c8 = arith.constant 8 : index
    %c0_16 = arith.constant 0 : index
    %18 = vector.load %arg7[%c8, %c0_16] : memref<36x256xf32, #tpu.memory_space<vmem>>, vector<4x256xf32>
    tpu.vector_store %arg7[%c8, %c0_16], %17 {strides = array<i32>} : memref<36x256xf32, #tpu.memory_space<vmem>>, vector<4x256xf32>,
    %c0_17 = arith.constant 0 : index
    %c127 = arith.constant 127 : index
    %19 = vector.load %arg6[%c0_17, %c127] : memref<4x512xf32, #tpu.memory_space<vmem>>, vector<4x256xf32>
    %c1_18 = arith.constant 1 : index
    %c0_19 = arith.constant 0 : index
    %20 = vector.load %arg4[%c1_18, %c0_19] : memref<2x256xf32, #tpu.memory_space<vmem>>, vector<1x256xf32>
    %21 = vector.broadcast %20 : vector<1x256xf32> to vector<4x256xf32>
    %22 = arith.mulf %19, %21 : vector<4x256xf32>
    %c12 = arith.constant 12 : index
    %c0_20 = arith.constant 0 : index
    %23 = vector.load %arg7[%c12, %c0_20] : memref<36x256xf32, #tpu.memory_space<vmem>>, vector<4x256xf32>
    tpu.vector_store %arg7[%c12, %c0_20], %22 {strides = array<i32>} : memref<36x256xf32, #tpu.memory_space<vmem>>, vector<4x256xf32>,
    %c0_21 = arith.constant 0 : index
    %c128_22 = arith.constant 128 : index
    %24 = vector.load %arg6[%c0_21, %c128_22] : memref<4x512xf32, #tpu.memory_space<vmem>>, vector<4x256xf32>
    %c16 = arith.constant 16 : index
    %c0_23 = arith.constant 0 : index
    %25 = vector.load %arg7[%c16, %c0_23] : memref<36x256xf32, #tpu.memory_space<vmem>>, vector<4x256xf32>
    tpu.vector_store %arg7[%c16, %c0_23], %24 {strides = array<i32>} : memref<36x256xf32, #tpu.memory_space<vmem>>, vector<4x256xf32>,
    %c0_24 = arith.constant 0 : index
    %c129 = arith.constant 129 : index
    %26 = vector.load %arg6[%c0_24, %c129] : memref<4x512xf32, #tpu.memory_space<vmem>>, vector<4x256xf32>
    %c0_25 = arith.constant 0 : index
    %c0_26 = arith.constant 0 : index
    %27 = vector.load %arg4[%c0_25, %c0_26] : memref<2x256xf32, #tpu.memory_space<vmem>>, vector<1x256xf32>
    %28 = vector.broadcast %27 : vector<1x256xf32> to vector<4x256xf32>
    %29 = arith.mulf %26, %28 : vector<4x256xf32>
    %c20 = arith.constant 20 : index
    %c0_27 = arith.constant 0 : index
    %30 = vector.load %arg7[%c20, %c0_27] : memref<36x256xf32, #tpu.memory_space<vmem>>, vector<4x256xf32>
    tpu.vector_store %arg7[%c20, %c0_27], %29 {strides = array<i32>} : memref<36x256xf32, #tpu.memory_space<vmem>>, vector<4x256xf32>,
    %c0_28 = arith.constant 0 : index
    %c143 = arith.constant 143 : index
    %31 = vector.load %arg6[%c0_28, %c143] : memref<4x512xf32, #tpu.memory_space<vmem>>, vector<4x256xf32>
    %c1_29 = arith.constant 1 : index
    %c0_30 = arith.constant 0 : index
    %32 = vector.load %arg4[%c1_29, %c0_30] : memref<2x256xf32, #tpu.memory_space<vmem>>, vector<1x256xf32>
    %33 = vector.broadcast %32 : vector<1x256xf32> to vector<4x256xf32>
    %34 = arith.mulf %31, %33 : vector<4x256xf32>
    %c24 = arith.constant 24 : index
    %c0_31 = arith.constant 0 : index
    %35 = vector.load %arg7[%c24, %c0_31] : memref<36x256xf32, #tpu.memory_space<vmem>>, vector<4x256xf32>
    tpu.vector_store %arg7[%c24, %c0_31], %34 {strides = array<i32>} : memref<36x256xf32, #tpu.memory_space<vmem>>, vector<4x256xf32>,
    %c0_32 = arith.constant 0 : index
    %c144 = arith.constant 144 : index
    %36 = vector.load %arg6[%c0_32, %c144] : memref<4x512xf32, #tpu.memory_space<vmem>>, vector<4x256xf32>
    %c28 = arith.constant 28 : index
    %c0_33 = arith.constant 0 : index
    %37 = vector.load %arg7[%c28, %c0_33] : memref<36x256xf32, #tpu.memory_space<vmem>>, vector<4x256xf32>
    tpu.vector_store %arg7[%c28, %c0_33], %36 {strides = array<i32>} : memref<36x256xf32, #tpu.memory_space<vmem>>, vector<4x256xf32>,
    %c0_34 = arith.constant 0 : index
    %c145 = arith.constant 145 : index
    %38 = vector.load %arg6[%c0_34, %c145] : memref<4x512xf32, #tpu.memory_space<vmem>>, vector<4x256xf32>
    %c0_35 = arith.constant 0 : index
    %c0_36 = arith.constant 0 : index
    %39 = vector.load %arg4[%c0_35, %c0_36] : memref<2x256xf32, #tpu.memory_space<vmem>>, vector<1x256xf32>
    %40 = vector.broadcast %39 : vector<1x256xf32> to vector<4x256xf32>
    %41 = arith.mulf %38, %40 : vector<4x256xf32>
    %c32 = arith.constant 32 : index
    %c0_37 = arith.constant 0 : index
    %42 = vector.load %arg7[%c32, %c0_37] : memref<36x256xf32, #tpu.memory_space<vmem>>, vector<4x256xf32>
    tpu.vector_store %arg7[%c32, %c0_37], %41 {strides = array<i32>} : memref<36x256xf32, #tpu.memory_space<vmem>>, vector<4x256xf32>,
    %c0_38 = arith.constant 0 : index
    %c0_39 = arith.constant 0 : index
    %43 = vector.load %arg2[%c0_38, %c0_39] : memref<16x36xbf16, #tpu.memory_space<vmem>>, vector<16x36xbf16>
    %c0_40 = arith.constant 0 : index
    %c0_41 = arith.constant 0 : index
    %44 = vector.load %arg7[%c0_40, %c0_41] : memref<36x256xf32, #tpu.memory_space<vmem>>, vector<36x256xf32>
    %45 = arith.truncf %44 : vector<36x256xf32> to vector<36x256xbf16>
    %cst_42 = arith.constant dense<0.000000e+00> : vector<16x256xf32>
    %46 = tpu.matmul %43, %45, %cst_42 {dimension_numbers = #tpu.dot_dimension_numbers<[1], [0], [0], [1], [0, 0, 1, 1], [], []>} : vector<16x36xbf16>, vector<36x256xbf16>, vector<16x256xf32> -> vector<16x256xf32>
    %c0_43 = arith.constant 0 : index
    %c0_44 = arith.constant 0 : index
    %47 = vector.load %arg3[%c0_43, %c0_44] : memref<16x1xf32, #tpu.memory_space<vmem>>, vector<16x1xf32>
    %48 = vector.broadcast %47 : vector<16x1xf32> to vector<16x256xf32>
    %49 = arith.addf %46, %48 : vector<16x256xf32>
    %c0_45 = arith.constant 0 : index
    %c0_46 = arith.constant 0 : index
    %c0_47 = arith.constant 0 : index
    %50 = vector.load %arg5[%c0_45, %c0_46, %c0_47] : memref<1x16x256xf32, #tpu.memory_space<vmem>>, vector<1x16x256xf32>
    %51 = vector.shape_cast %50 : vector<1x16x256xf32> to vector<16x256xf32>
    %52 = vector.shape_cast %49 : vector<16x256xf32> to vector<1x16x256xf32>
    tpu.vector_store %arg5[%c0_45, %c0_46, %c0_47], %52 {strides = array<i32>} : memref<1x16x256xf32, #tpu.memory_space<vmem>>, vector<1x16x256xf32>,
    return
  }
  func.func @transform_0(%arg0: i32) -> (i32, i32, i32) {
    %c0_i32 = arith.constant 0 : i32
    %c0_i32_0 = arith.constant 0 : i32
    %c0_i32_1 = arith.constant 0 : i32
    return %arg0, %c0_i32, %c0_i32_0 : i32, i32, i32
  }
  func.func @transform_1(%arg0: i32) -> (i32, i32) {
    %c0_i32 = arith.constant 0 : i32
    %c0_i32_0 = arith.constant 0 : i32
    %c0_i32_1 = arith.constant 0 : i32
    return %c0_i32, %c0_i32_0 : i32, i32
  }
  func.func @transform_2(%arg0: i32) -> (i32, i32) {
    %c0_i32 = arith.constant 0 : i32
    %c0_i32_0 = arith.constant 0 : i32
    %c0_i32_1 = arith.constant 0 : i32
    return %c0_i32, %c0_i32_0 : i32, i32
  }
  func.func @transform_3(%arg0: i32) -> (i32, i32) {
    %c0_i32 = arith.constant 0 : i32
    %c0_i32_0 = arith.constant 0 : i32
    %c0_i32_1 = arith.constant 0 : i32
    return %c0_i32, %c0_i32_0 : i32, i32
  }
  func.func @transform_4(%arg0: i32) -> (i32, i32, i32) {
    %c0_i32 = arith.constant 0 : i32
    %c0_i32_0 = arith.constant 0 : i32
    %c0_i32_1 = arith.constant 0 : i32
    return %arg0, %c0_i32, %c0_i32_0 : i32, i32, i32
  }
}

</mosaic_0001>

<bundles_post_ra>
// kernel: tpu_custom_call.1
= control target key start
LH: loop header
LB: loop body
LE: loop exit
PB: predicated region body
PF: predicated region fallthrough
CT: control target
= control target key end

     0   :  { %9 = vsyncpa [#allocation5], 0  ;;  %s1122_s0 = inlined_call_operand.vmem [shape: f32[2,4,256], index: 0, kind: input, shape index: {}]   ;;  %s1123_s1 = inlined_call_operand.hbm [shape: bf16[16,36], index: 1, kind: input, shape index: {}]   ;;  %s1124_s2 = inlined_call_operand.vmem [shape: f32[16,1], index: 2, kind: input, shape index: {}]   ;;  %s1125_s3 = inlined_call_operand.vmem [shape: f32[2,256], index: 3, kind: input, shape index: {}]   ;;  %s1126_s4 = inlined_call_operand.hbm [shape: f32[2,16,256], index: 4, kind: output, shape index: {}]  }
   0x1   :  { %10 = vsyncpa [#allocation6], 0 }
   0x2   :  { %12 = vsyncpa [#allocation6 + $0x1], 0  ;;  %s895_s15 = smov 0   ;;  %s897_s16 = smov 0  }
   0x3   :  { %s899_s17 = smov 0   ;;  %s901_s18 = smov 0  }
   0x4 LB: > { %s916_s19 = sadd.s32 4294967295, %s853_s18   ;;  %s666_s20 = sadd.s32 4294967294, %s853_s18   ;;  %s853_s18 = sphi %s901_s18, %s1142_s18   ;;  %s849_s17 = sphi %s899_s17, %s1141_s17   ;;  %s845_s16 = sphi %s897_s16, %s1140_s16   ;;  %s841_s15 = sphi %s895_s15, %s1139_s15  }
   0x5   : > { %s920_s21 = sadd.s32 1, %s853_s18   ;;  %s114_s22 = sadd.s32 1, %s849_s17 }
   0x6   : > { %s111_s23 = ssub.s32 %s853_s18, %s920_s21  ;;  %p124_p0 = scmp.ne.s32.totalorder %s849_s17, %s845_s16 }
   0x7   : > { %p112_p1 = scmp.eq.s32.totalorder %s111_s23, 0  ;;  %p125_p2 = scmp.eq.s32.totalorder %s916_s19, 1 }
   0x8   : > { %p130_p3 = scmp.ne.s32.totalorder %s845_s16, %s841_s15  ;;  %p131_p4 = scmp.eq.s32.totalorder %s666_s20, 1 }
   0x9   : > { %s931_s24 = scalar_select %p112_p1, %s849_s17, %s114_s22  }
   0xa   : > { %p933_p5 = por %p125_p2, %p124_p0  ;;  %p937_p6 = por %p131_p4, %p130_p3 }
   0xb   : > { %p667_p7 = scmp.ge.s32.totalorder %s853_s18, 1  ;;  %p138_p8 = scmp.lt.s32.totalorder %s853_s18, 3 }
   0xc   : > { %s1130_s25 = scalar_select %p933_p5, 1, 0 }
   0xd   : > { %s1131_s26 = scalar_select %p937_p6, 1, 0 }
   0xe   : > { %p1127_p9 = scmp.eq.s32.totalorder %s916_s19, 0  ;;  %p944_p10 = pnand %p667_p7, %p138_p8 }
   0xf   : > { %s855_s28 = smov [#allocation4]   ;;  %s759_s7 = scalar_lea.hbm %s1123_s1, 128 }
  0x10   : > { %s1132_s27 = scalar_select %p944_p10, 1, 0 }
  0x11   : > { %s150_s29 = sshll.u32 %s855_s28, 4  ;;  %p694_p11 = pneg %p944_p10  ;;  %s151_s29 = int_to_ptr.vmem [resolvable:$true] %s150_s29 }
  0x12   : > { %p760_p13 = scmp.ne.s32.totalorder %s1123_s1, %s759_s7  ;;  %p766_p3 = scmp.lt.u32.totalorder %s759_s7, %s1123_s1 }
  0x13   : > { %p952_p12 = pnand %p1127_p9, %p694_p11 }
  0x15   : > { %p761_p0 = pneg %p952_p12 }
  0x17   : > { %p762_p1 = pnand %p761_p0, %p760_p13 }
  0x19   : > { %p763_p2 = pneg %p762_p1 }
  0x1b   : > { %p768_p4 = pnand %p766_p3, %p763_p2 }
  0x1d   : > { %771 = shalt.err (!%p768_p4)
}
  0x1e   : > { %s772_s12 = scalar_lea.vmem %s151_s29, 128  ;;  %p780_p9 = scmp.lt.s32.totalorder %s151_s29, %s151_s29 }
  0x1f   : > { %p773_p7 = scmp.ne.s32.totalorder %s151_s29, %s772_s12  ;;  %p781_p6 = scmp.lt.s32.totalorder %s772_s12, %s772_s12 }
  0x21   : > { %p775_p8 = pnand %p773_p7, %p761_p0  ;;  %p782_p5 = por %p781_p6, %p780_p9 }
  0x23   : > { %p776_p11 = pneg %p775_p8 }
  0x25   : > { %p783_p10 = pnand %p782_p5, %p776_p11 }
  0x27   : > { %786 = shalt.err (!%p783_p10)
}
  0x28   : > { %s856_s13 = smov 64   ;;  %s857_s14 = smov 4  }
  0x29   : > { %697 = dma.hbm_to_vmem [thread:$0]  (!%p952_p12), %s1123_s1, 128, %s151_s29, [#allocation5], %s856_s13, %s856_s13, %s857_s14  }
  0x2a   : > { %p1134_p13 = scmp.ne.s32.totalorder %s1132_s27, 0 }
  0x2b   : > { %p1135_p1 = scmp.eq.s32.totalorder (!%p1134_p13), %s916_s19, 0 }
  0x2c   : > { %180 = sbr.rel (%p1134_p13) target bundleno = 576 (0x240), region = 36 }
  0x33   : > { %832 = dma.done.wait (%p1135_p1), [#allocation5], 128   ;;  %p1136_p0 = pmov %p1135_p1 }
  0x34   : > { %v221_v0 = vlaneseq  ;;  %v858_v1 = vmov 0.0   ;;  %p206_p5 = scmp.lt.s32.totalorder %s916_s19, 1  ;;  %v676_v5 = vld [vmem:[%s1125_s3 + $0x1] ss:$2 sm:$0x3]  ;;  %s859_s28 = smov 127  }
  0x35   : > { %834 = vsyncadd (%p1136_p0), [#allocation5], 4294967168  ;;  %212 = vst [vmem:[#allocation2] sm:$0xf] %v858_v1  ;;  %s860_s27 = smov 111   ;;  %s862_s29 = smov 15  }
  0x36   : > { %213 = vst [vmem:[#allocation2 + $0xc] sm:$0xf] %v858_v1  ;;  %v222_v2 = vshrl.u32 %v221_v0, 7  ;;  %s207_s23 = scalar_select %p206_p5, %s916_s19, 1  ;;  %vm328_vm0 = vcmask 1039360   ;;  %vm233_vm1 = vcmask 908288  }
  0x37   : > { %v675_v6 = vld [vmem:[%s1125_s3 + $0x1] ss:$2 sm:$0x3]  ;;  %v276_v11 = vld [vmem:[%s1125_s3] ss:$2 sm:$0x3] }
  0x38   : > { %v223_v3 = vsub.s32 0, %v222_v2  ;;  %v227_v4 = vsub.s32 1, %v222_v2  ;;  %v677_v12 = vld [vmem:[%s1125_s3 + $0x1] ss:$2 sm:$0x3]  ;;  %s686_s13 = sshll.u32 %s207_s23, 3 }
  0x39   : > { %v359_v17 = vld [vmem:[%s1125_s3] ss:$2 sm:$0x3]  ;;  %s210_s22 = scalar_lea.vmem %s1122_s0, %s686_s13  ;;  %s861_s23 = smov 113   ;;  %vm290_vm2 = vcmask 924672   ;;  %vm305_vm3 = vcmask 121856  }
  0x3a   : > { %v319_v7 = vrot.slane %v676_v5, %v223_v3  ;;  %v323_v8 = vrot.slane %v676_v5, %v227_v4  ;;  %v224_v9 = vrot.slane %v675_v6, %v223_v3  ;;  %v228_v10 = vrot.slane %v675_v6, %v227_v4  ;;  %v451_v18 = vld [vmem:[%s1125_s3] ss:$2 sm:$0x3]  ;;  %s863_s30 = smov 1   ;;  %s864_s5 = smov 17  }
  0x3b   : > { %v281_v13 = vrot.slane %v276_v11, %v223_v3  ;;  %v285_v14 = vrot.slane %v276_v11, %v227_v4  ;;  %v401_v15 = vrot.slane %v677_v12, %v223_v3  ;;  %v405_v16 = vrot.slane %v677_v12, %v227_v4  ;;  %v1003_v27 = vld [vmem:[%s210_s22] sm:$0xff]  ;;  %s865_s6 = smov 16   ;;  %s866_s7 = smov 112  }
  0x3c   : > { %v324_v19 = vcombine.low %v319_v7, %v323_v8  ;;  %v229_v20 = vcombine.low %v224_v9, %v228_v10  ;;  %v364_v22 = vrot.slane %v359_v17, %v223_v3  ;;  %v368_v23 = vrot.slane %v359_v17, %v227_v4  ;;  %215 = vst [vmem:[#allocation2 + $0x4] sm:$0xff] %v1003_v27  ;;  %s203_s12 = sand.u32 1, %s845_s16   ;;  %s687_s22 = sshll.u32 %s916_s19, 9 }
  0x3d   : > { %v286_v21 = vcombine.low %v281_v13, %v285_v14  ;;  %v406_v24 = vcombine.low %v401_v15, %v405_v16  ;;  %v456_v25 = vrot.slane %v451_v18, %v223_v3  ;;  %v460_v26 = vrot.slane %v451_v18, %v227_v4  ;;  %355 = vst [vmem:[#allocation3 + $0x20] sm:$0xf] %v1003_v27  ;;  %v756_v34 = vld [vmem:[#allocation2 + $0xc] ss:$0 sps:$4 sm:$0xff]   ;;  %s672_s13 = sshll.u32 %s203_s12, 5  ;;  %s1080_s19 = scalar_lea.sflag [#allocation6], %s203_s12 }
  0x3e   : > { %325 = vrot.lane.b32.xlu1 %v324_v19, %s859_s28  ;;  %230 = vrot.lane.b32.xlu0 %v229_v20, %s860_s27  ;;  %v369_v28 = vcombine.low %v364_v22, %v368_v23  ;;  %v434_v33 = vcombine.low %v1003_v27, %v1003_v27  ;;  %v395_v49 = vld [vmem:[#allocation2 + $0xc] sm:$0xf]  ;;  %vm344_vm4 = vcmask 7168   ;;  %vm267_vm5 = vcmask 130048   ;;  %s205_s14 = scalar_lea.vmem [#allocation7], %s672_s13  ;;  %p1137_p9 = scmp.ne.s32.totalorder %s1130_s25, 0 }
  0x3f   : > { %v461_v29 = vcombine.low %v456_v25, %v460_v26  ;;  %v353_v62 = vcombine.high %v1003_v27, %v1003_v27  ;;  %v358_v3 = vld [vmem:[#allocation2 + $0xc] sm:$0xf]  ;;  %vm442_vm6 = vcmask 916480   ;;  %vm248_vm7 = vcmask 138240   ;;  %s592_s20 = sshll.u32 %s205_s14, 4  ;;  %s1073_s20 = int_to_ptr.vmem [resolvable:$true] %s592_s20 }
  0x40   : > { %v450_v22 = vld [vmem:[#allocation2 + $0xc] sm:$0xf]  ;;  %v867_v26 = vmov 0   ;;  %vm524_vm8 = vcmask 1041408   ;;  %vm520_vm9 = vcmask 293888  }
  0x41   : > { %356 = vst [vmem:[#allocation3 + $0x28] sm:$0xf] %v353_v62  ;;  %563 = vmatprep.mubr.bf16.mxu0 %v867_v26  ;;  %751 = vset.pattern.permute.xlu0 %v867_v26 }
  0x42   : > { %287 = vrot.lane.b32.xlu0 %v286_v21, %s861_s23  ;;  %407 = vrot.lane.b32.xlu1 %v406_v24, %s862_s29 }
  0x43   : > { %v753_v30 = vld [vmem:[#allocation2 + $0x8] ss:$0 sps:$4 sm:$0xff]   ;;  %v255_v31 = vld [vmem:[#allocation2] sm:$0xff]  ;;  %752 = vset.pattern.permute.xlu1 %v867_v26 }
  0x44   : > { %v259_v32 = vcombine.low %v255_v31, %v255_v31  ;;  %v217_v37 = vld [vmem:[#allocation2 + $0x8] sm:$0xf] }
  0x45   : > { %v275_v44 = vld [vmem:[#allocation2 + $0x8] sm:$0xf] }
  0x46   : > { %370 = vrot.lane.b32.xlu0 %v369_v28, %s863_s30  ;;  %462 = vrot.lane.b32.xlu1 %v461_v29, %s864_s5  ;;  %v313_v57 = vld [vmem:[#allocation2 + $0x8] sm:$0xf] }
  0x47   : > { %v504_v28 = vld [vmem:[%s1124_s2 + $0x8] sm:$0xff] }
  0x4a   : > { %265 = vrot.lane.b32.xlu1 %v753_v30, %s865_s6  ;;  %263 = vrot.lane.b32.xlu0 %v255_v31, %s865_s6 }
  0x4e   : > { %438 = vrot.lane.b32.xlu0 %v1003_v27, %s866_s7  ;;  %261 = vrot.lane.b32.xlu1 %v259_v32, %s865_s6 }
  0x52   : > { %436 = vrot.lane.b32.xlu0 %v434_v33, %s866_s7  ;;  %440 = vrot.lane.b32.xlu1 %v756_v34, %s866_s7 }
  0xb0   : > { %v326_v35 = vpop.permute.xlu1 %325  ;;  %v231_v36 = vpop.permute.xlu0 %230 }
  0xb1   : > { %v327_v38 = vrot.slane %v326_v35, 4  ;;  %v232_v39 = vrot.slane %v231_v36, 4 }
  0xb3   : > { %v329_v40 = vsel %vm328_vm0, %v327_v38, %v326_v35  ;;  %v238_v41 = vmul.f32 %v232_v39, %v217_v37  ;;  %v234_v46 = vsel %vm233_vm1, %v232_v39, %v231_v36  ;;  %v333_v1 = vmul.f32 %v327_v38, %v313_v57 }
  0xb4   : > { %v1018_v42 = vmul.f32 %v329_v40, %v255_v31  ;;  %v288_v43 = vpop.permute.xlu0 %287  ;;  %v408_v45 = vpop.permute.xlu1 %407  ;;  %v237_v51 = vmul.f32 %v255_v31, %v234_v46 }
  0xb5   : > { %v289_v47 = vrot.slane %v288_v43, 4  ;;  %246 = vrot.lane.b32.xlu1 %v238_v41, %s864_s5  ;;  %v409_v48 = vrot.slane %v408_v45, 4  ;;  %v337_v9 = vcombine.low %v333_v1, %v333_v1 }
  0xb6   : > { %340 = vrot.lane.b32.xlu0 %v1018_v42, %s863_s30  ;;  %v241_v10 = vcombine.high %v237_v51, %v237_v51  ;;  %v336_v19 = vcombine.low %v1018_v42, %v1018_v42 }
  0xb7   : > { %v295_v50 = vmul.f32 %v289_v47, %v275_v44  ;;  %v291_v54 = vsel %vm290_vm2, %v289_v47, %v288_v43  ;;  %v414_v55 = vmul.f32 %v409_v48, %v395_v49  ;;  %v410_v59 = vsel %vm305_vm3, %v409_v48, %v408_v45 }
  0xb8   : > { %v371_v52 = vpop.permute.xlu0 %370  ;;  %v463_v53 = vpop.permute.xlu1 %462  ;;  %v294_v58 = vmul.f32 %v291_v54, %v255_v31  ;;  %v413_v2 = vmul.f32 %v410_v59, %v1003_v27 }
  0xb9   : > { %303 = vrot.lane.b32.xlu1 %v295_v50, %s862_s29  ;;  %v372_v56 = vrot.slane %v371_v52, 4  ;;  %v464_v15 = vrot.slane %v463_v53, 4 }
  0xba   : > { %242 = vrot.lane.b32.xlu0 %v237_v51, %s864_s5  ;;  %v298_v17 = vcombine.high %v294_v58, %v294_v58  ;;  %v417_v20 = vcombine.high %v413_v2, %v413_v2 }
  0xbb   : > { %v373_v63 = vsel %vm344_vm4, %v372_v56, %v371_v52  ;;  %v377_v8 = vmul.f32 %v372_v56, %v358_v3  ;;  %v465_v18 = vsel %vm248_vm7, %v464_v15, %v463_v53  ;;  %v469_v24 = vmul.f32 %v464_v15, %v450_v22 }
  0xbc   : > { %v266_v60 = vpop.permute.xlu1 %265  ;;  %v264_v61 = vpop.permute.xlu0 %263  ;;  %v376_v4 = vmul.f32 %v373_v63, %v1003_v27  ;;  %v468_v21 = vmul.f32 %v465_v18, %v1003_v27  ;;  %v503_v27 = vld [vmem:[%s1124_s2] sm:$0xff] }
  0xbd   : > { %422 = vrot.lane.b32.xlu1 %v414_v55, %s861_s23  ;;  %v269_v0 = vsel %vm267_vm5, %v264_v61, %v266_v60  ;;  %v381_v16 = vcombine.low %v377_v8, %v377_v8 }
  0xbe   : > { %299 = vrot.lane.b32.xlu0 %v294_v58, %s862_s29  ;;  %273 = vst [vmem:[#allocation3 + $0x8] sm:$0xf0] %v269_v0  ;;  %v380_v23 = vcombine.low %v376_v4, %v376_v4  ;;  %v472_v25 = vcombine.high %v468_v21, %v468_v21 }
  0xc0   : > { %v439_v5 = vpop.permute.xlu0 %438  ;;  %v262_v6 = vpop.permute.xlu1 %261 }
  0xc1   : > { %418 = vrot.lane.b32.xlu1 %v413_v2, %s861_s23  ;;  %v268_v7 = vsel %vm267_vm5, %v262_v6, %v264_v61 }
  0xc2   : > { %384 = vrot.lane.b32.xlu0 %v376_v4, %s859_s28  ;;  %272 = vst [vmem:[#allocation3] sm:$0xf0] %v268_v7 }
  0xc4   : > { %v437_v11 = vpop.permute.xlu0 %436  ;;  %v441_v12 = vpop.permute.xlu1 %440 }
  0xc5   : > { %342 = vrot.lane.b32.xlu1 %v337_v9, %s863_s30  ;;  %v443_v13 = vsel %vm442_vm6, %v437_v11, %v439_v5  ;;  %v444_v14 = vsel %vm442_vm6, %v439_v5, %v441_v12  ;;  %v758_v12 = vld [vmem:[#allocation4] sm:$0xff]  }
  0xc6   : > { %244 = vrot.lane.b32.xlu0 %v241_v10, %s864_s5  ;;  %447 = vst [vmem:[#allocation3 + $0x30] sm:$0xf0] %v443_v13  ;;  %448 = vst [vmem:[#allocation3 + $0x38] sm:$0xf0] %v444_v14 }
  0xc9   : > { %386 = vrot.lane.b32.xlu1 %v381_v16, %s859_s28 }
  0xca   : > { %301 = vrot.lane.b32.xlu0 %v298_v17, %s862_s29  ;;  %s787_s29 = scalar_lea.vmem %s1073_s20, 512 }
  0xcb   : > { %p788_p6 = scmp.ne.s32.totalorder %s1073_s20, %s787_s29 }
  0xcd   : > { %338 = vrot.lane.b32.xlu1 %v336_v19, %s863_s30  ;;  %p789_p10 = pnand %p788_p6, %p1137_p9  ;;  %s868_s30 = smov [#allocation7]  }
  0xce   : > { %420 = vrot.lane.b32.xlu0 %v417_v20, %s861_s23  ;;  %s1078_s23 = scalar_lea.hbm %s1126_s4, %s687_s22  ;;  %s791_s5 = sshll.u32 %s868_s30, 4  ;;  %s792_s5 = int_to_ptr.vmem [resolvable:$false] %s791_s5 }
  0xcf   : > { %p790_p12 = pneg %p789_p10  ;;  %s793_s7 = scalar_lea.vmem %s792_s5, 1024 }
  0xd0   : > { %p794_p2 = scmp.lt.s32.totalorder %s1073_s20, %s792_s5  ;;  %p795_p3 = scmp.lt.s32.totalorder %s793_s7, %s787_s29 }
  0xd1   : > { %473 = vrot.lane.b32.xlu1 %v468_v21, %s860_s27 }
  0xd2   : > { %382 = vrot.lane.b32.xlu0 %v380_v23, %s859_s28  ;;  %p796_p4 = por %p795_p3, %p794_p2 }
  0xd4   : > { %p797_p7 = pnand %p796_p4, %p790_p12 }
  0xd5   : > { %477 = vrot.lane.b32.xlu1 %v469_v24, %s860_s27 }
  0xd6   : > { %475 = vrot.lane.b32.xlu0 %v472_v25, %s860_s27 }
  0xd9   : > { %512 = vperm.xlu1 %752, %v504_v28  }
  0xda   : > { %507 = vperm.xlu0 %751, %v503_v27  }
 0x127   : > { %v247_v29 = vpop.permute.xlu1 %246 }
 0x128   : > { %v341_v30 = vpop.permute.xlu0 %340 }
 0x12b   : > { %v304_v31 = vpop.permute.xlu1 %303 }
 0x12c   : > { %v243_v32 = vpop.permute.xlu0 %242 }
 0x12f   : > { %v423_v33 = vpop.permute.xlu1 %422 }
 0x130   : > { %v300_v34 = vpop.permute.xlu0 %299 }
 0x133   : > { %v419_v35 = vpop.permute.xlu1 %418 }
 0x134   : > { %v385_v36 = vpop.permute.xlu0 %384 }
 0x137   : > { %v343_v37 = vpop.permute.xlu1 %342 }
 0x138   : > { %v346_v38 = vsel %vm344_vm4, %v341_v30, %v343_v37  ;;  %v245_v39 = vpop.permute.xlu0 %244 }
 0x139   : > { %350 = vst [vmem:[#allocation3 + $0x18] sm:$0xf0] %v346_v38  ;;  %v249_v40 = vsel %vm248_vm7, %v243_v32, %v245_v39  ;;  %v250_v41 = vsel %vm248_vm7, %v245_v39, %v247_v29 }
 0x13a   : > { %253 = vst [vmem:[#allocation3] sm:$0xf] %v249_v40  ;;  %254 = vst [vmem:[#allocation3 + $0x8] sm:$0xf] %v250_v41 }
 0x13b   : > { %v387_v42 = vpop.permute.xlu1 %386 }
 0x13c   : > { %v389_v43 = vsel %vm328_vm0, %v385_v36, %v387_v42  ;;  %v302_v44 = vpop.permute.xlu0 %301 }
 0x13d   : > { %393 = vst [vmem:[#allocation3 + $0x28] sm:$0xf0] %v389_v43  ;;  %v306_v45 = vsel %vm305_vm3, %v300_v34, %v302_v44  ;;  %v307_v46 = vsel %vm305_vm3, %v302_v44, %v304_v31 }
 0x13e   : > { %310 = vst [vmem:[#allocation3 + $0x10] sm:$0xf] %v306_v45  ;;  %311 = vst [vmem:[#allocation3 + $0x18] sm:$0xf] %v307_v46 }
 0x13f   : > { %v339_v47 = vpop.permute.xlu1 %338 }
 0x140   : > { %v345_v48 = vsel %vm344_vm4, %v339_v47, %v341_v30  ;;  %v421_v49 = vpop.permute.xlu0 %420 }
 0x141   : > { %349 = vst [vmem:[#allocation3 + $0x10] sm:$0xf0] %v345_v48  ;;  %v424_v50 = vsel %vm290_vm2, %v419_v35, %v421_v49  ;;  %v425_v51 = vsel %vm290_vm2, %v421_v49, %v423_v33  ;;  %v488_v55 = vld [vmem:[#allocation3 + $0x8] sm:$0xff]  ;;  %v487_v60 = vld [vmem:[#allocation3] sm:$0xff] }
 0x142   : > { %428 = vst [vmem:[#allocation3 + $0x30] sm:$0xf] %v424_v50  ;;  %429 = vst [vmem:[#allocation3 + $0x38] sm:$0xf] %v425_v51 }
 0x143   : > { %v474_v52 = vpop.permute.xlu1 %473 }
 0x144   : > { %v383_v53 = vpop.permute.xlu0 %382  ;;  %v492_v1 = vld [vmem:[#allocation3 + $0x28] sm:$0xff] }
 0x145   : > { %v388_v54 = vsel %vm328_vm0, %v383_v53, %v385_v36  ;;  %v490_v56 = vld [vmem:[#allocation3 + $0x18] sm:$0xff] }
 0x146   : > { %392 = vst [vmem:[#allocation3 + $0x20] sm:$0xf0] %v388_v54  ;;  %v498_v57 = vpack.c.bf16 %v490_v56, %v488_v55 }
 0x147   : > { %v478_v58 = vpop.permute.xlu1 %477 }
 0x148   : > { %531 = vmatprep.subr.bf16.mxu0 %v498_v57  ;;  %v476_v59 = vpop.permute.xlu0 %475  ;;  %v489_v61 = vld [vmem:[#allocation3 + $0x10] sm:$0xff] }
 0x149   : > { %v479_v62 = vsel %vm233_vm1, %v474_v52, %v476_v59  ;;  %v480_v63 = vsel %vm233_vm1, %v476_v59, %v478_v58  ;;  %v497_v0 = vpack.c.bf16 %v489_v61, %v487_v60  ;;  %v494_v2 = vld [vmem:[#allocation3 + $0x38] sm:$0xff]  ;;  %v493_v5 = vld [vmem:[#allocation3 + $0x30] sm:$0xff] }
 0x14a   : > { %483 = vst [vmem:[#allocation3 + $0x40] sm:$0xf] %v479_v62  ;;  %484 = vst [vmem:[#allocation3 + $0x48] sm:$0xf] %v480_v63  ;;  %v500_v3 = vpack.c.bf16 %v494_v2, %v492_v1 }
 0x14b   : > { %532 = vmatpush1.bf16.msra.mxu0 %v497_v0 }
 0x14c   : > { %533 = vmatprep.subr.bf16.mxu0 %v500_v3 }
 0x14d   : > { %v491_v4 = vld [vmem:[#allocation3 + $0x20] sm:$0xff] }
 0x14e   : > { %v499_v6 = vpack.c.bf16 %v493_v5, %v491_v4 }
 0x150   : > { %534 = vmatpush1.bf16.msra.mxu0 %v499_v6 }
 0x151   : > { %v496_v7 = vld [vmem:[#allocation3 + $0x48] sm:$0xf]  ;;  %v495_v8 = vld [vmem:[#allocation3 + $0x40] sm:$0xf] }
 0x152   : > { %v502_v9 = vpack.c.bf16 %v496_v7, %v496_v7  ;;  %v501_v10 = vpack.c.bf16 %v495_v8, %v495_v8 }
 0x154   : > { %679 = vmatprep.subr.msk.bf16.mxu0 %vm524_vm8, %v502_v9  ;;  %v526_v11 = vsel %vm524_vm8, %v501_v10, 0 }
 0x155   : > { %536 = vmatpush1.bf16.msra.mxu0 %v526_v11 }
 0x158   : > { %680 = vmatmul.mubr.msk.bf16.vlgmr.msra.gmra.mrb[0].mxu0 %vm520_vm9, %v758_v12  ;;  %v513_v15 = vpop.permute.xlu1 %512 }
 0x159   : > { %v508_v13 = vpop.permute.xlu0 %507 }
 0x22b   : > { %v565_v14 = vpop.f32.mrb[0].mxu0 }
 0x22c   : > { %v566_v16 = vadd.f32 %v565_v14, %v508_v13  ;;  %v567_v17 = vpop.f32.mrb[1].mxu0 }
 0x22d   : > { %v568_v18 = vadd.f32 %v567_v17, %v508_v13  ;;  %v569_v19 = vpop.f32.mrb[2].mxu0 }
 0x22e   : > { %574 = vst [vmem:[%s205_s14] sm:$0xff] %v566_v16  ;;  %v570_v20 = vadd.f32 %v569_v19, %v513_v15  ;;  %v571_v21 = vpop.f32.mrb[3].mxu0 }
 0x22f   : > { %575 = vst [vmem:[%s205_s14 + $0x8] sm:$0xff] %v568_v18  ;;  %v572_v22 = vadd.f32 %v571_v21, %v513_v15 }
 0x230   : > { %576 = vst [vmem:[%s205_s14 + $0x10] sm:$0xff] %v570_v20 }
 0x231   : > { %577 = vst [vmem:[%s205_s14 + $0x18] sm:$0xff] %v572_v22 }
 0x232   : > { %800 = shalt.err (!%p797_p7)
}
 0x233   : > { %s801_s8 = scalar_lea.hbm %s1078_s23, 512  ;;  %s805_s11 = scalar_lea.hbm %s1126_s4, 1024 }
 0x234   : > { %p802_p8 = scmp.ne.s32.totalorder %s1078_s23, %s801_s8  ;;  %p806_p1 = scmp.lt.u32.totalorder %s1078_s23, %s1126_s4 }
 0x235   : > { %p807_p0 = scmp.lt.u32.totalorder %s805_s11, %s801_s8  ;;  %p809_p6 = scmp.lt.u32.totalorder %s801_s8, %s1078_s23 }
 0x236   : > { %p803_p11 = pnand %p802_p8, %p1137_p9 }
 0x237   : > { %p808_p5 = por %p807_p0, %p806_p1 }
 0x238   : > { %p804_p13 = pneg %p803_p11 }
 0x239   : > { %p810_p10 = por %p809_p6, %p808_p5 }
 0x23b   : > { %p811_p12 = pnand %p810_p10, %p804_p13 }
 0x23d   : > { %814 = shalt.err (!%p811_p12)
}
 0x23e   : > { %s869_s14 = smov 256  }
 0x23f   : > { %692 = dma.vmem_to_hbm [thread:$0]  (%p1137_p9), %s1073_s20, 512, %s1078_s23, %s1080_s19, %s869_s14, %s869_s14, %s865_s6  }
 0x240 PF: > { %p704_p2 = scmp.ge.s32.totalorder %s853_s18, 2  ;;  %s607_s22 = sand.u32 1, %s841_s15  }
 0x241   : > { %p1138_p3 = scmp.ne.s32.totalorder %s1131_s26, 0  ;;  %s608_s28 = scalar_lea.sflag [#allocation6], %s607_s22 }
 0x243   : > { %p699_p4 = pnand %p704_p2, %p1138_p3 }
 0x245   : > { %836 = dma.done.wait (!%p699_p4), %s608_s28, 512  }
 0x246   : > { %838 = vsyncadd (!%p699_p4), %s608_s28, 4294966784  ;;  %p15_p7 = scmp.ge.s32.totalorder %s920_s21, 4   ;;  %s1139_s15 = smov %s845_s16 }
 0x247   : > { %s1140_s16 = smov %s849_s17  ;;  %s1141_s17 = smov %s931_s24 }
 0x248   : > { %s1142_s18 = smov %s920_s21  ;;  %17 = sbr.rel (!%p15_p7) target bundleno = 4 (0x4), region = 77 }
 0x24f   :  { %613 = vsyncpa [#allocation5], 1 }
 0x250   :  { %615 = vsyncpa [#allocation5 + $0x1], 1 }
 0x251   :  { %616 = vsyncpa [#allocation6], 1 }
 0x252   :  { %618 = vsyncpa [#allocation6 + $0x1], 1 }

</bundles_post_ra>
